<compile_context>
chip_gen: v5e
topology: v5e:2x2
jax: 0.10.0
libtpu: 0.0.40
codegen_flags: <defaults>
</compile_context>

<pallas_src>
import functools
import jax
import jax.numpy as jnp
from jax.experimental import pallas as pl
from jax.experimental.pallas import tpu as pltpu

# ----------------------------- configuration --------------------------------
WORD_VOCAB = 50
WORD_DIM = 16
CHAR_VOCAB = 20
CHAR_EMBED_DIM = 4
CHAR_FEATURE_SIZE = 4
CONV_FILTER_SIZE = 3
MAX_WORD_LEN = 5                       # max_word_len_entity
HIDDEN_DIM = 8                         # hidden_dim (per direction)
ENTITY_EMBED_DIM = 4
ENTITY_CONV_FILTER_SIZE = 1
INPUT_DIM = WORD_DIM + CHAR_FEATURE_SIZE          # LSTM input dim (cat)
POOL_WIN = MAX_WORD_LEN + CONV_FILTER_SIZE - 1    # MaxPool1d kernel == stride

KPAD = 128                             # lane-dense contraction width
GPAD = 128                             # lane-dense output width
GATE_OFF = 64                          # gate (8H) lanes live at [64:128]
ROW_BLOCK = 1024                       # row tile for the fused projection kernel
NEG_FILL = -1e30                       # finite stand-in for masked_fill(-inf)


def _round_up(x, m):
    return ((x + m - 1) // m) * m


# ----------------------------- Pallas kernels --------------------------------
def _char_word_inproj_kernel(x_ref, w1_ref, bias_ref, wchar_ref, o_ref,
                             *, pool_win, cout):
    """One fused MXU matmul: [char im2col | word emb] @ blockdiag(conv, W_ih_word)
    -> max-pool over the pool window -> tanh -> char part of the LSTM input
    projection added on the VPU.  Lanes [GATE_OFF:] of the output hold the
    fwd||bwd LSTM input projections x_t @ W_ih.T + b_ih."""
    res = jnp.dot(x_ref[...], w1_ref[...],
                  preferred_element_type=jnp.float32) + bias_ref[...]   # (rb, 128)
    # max-pool over the pool window (lane groups of `cout`, lanes [0:pool_win*cout])
    pooled = res[:, 0:cout]
    for p in range(1, pool_win):
        pooled = jnp.maximum(pooled, res[:, p * cout:(p + 1) * cout])
    char_feat = jnp.tanh(pooled)                                        # (rb, cout) f32
    # char projection: K=4 contraction done as 4 broadcast mul-adds on the VPU
    proj = char_feat[:, 0:1] * wchar_ref[0:1, :]
    for c in range(1, cout):
        proj = proj + char_feat[:, c:c + 1] * wchar_ref[c:c + 1, :]
    o_ref[...] = res + proj                                             # (rb, 128) full store


def fused_char_word_inproj(x_comb, w1, bias, wchar, *, pool_win, cout):
    """x_comb:(R, 128) -> (R, 128); lanes [GATE_OFF:] hold xp (fwd||bwd, 8H)."""
    R, KP = x_comb.shape
    G = w1.shape[1]
    Rp8 = _round_up(R, 8)
    rb = min(Rp8, ROW_BLOCK)
    if 8 < Rp8 <= ROW_BLOCK:
        # split into >=2 grid steps so "parallel" can shard across v7x's 2 TCs
        rb = _round_up((Rp8 + 1) // 2, 8)
    Rp = _round_up(R, rb)
    pad = Rp - R
    x_p = jnp.pad(x_comb, ((0, pad), (0, 0))).astype(jnp.bfloat16)
    out = pl.pallas_call(
        functools.partial(_char_word_inproj_kernel,
                          pool_win=pool_win, cout=cout),
        out_shape=jax.ShapeDtypeStruct((Rp, G), jnp.float32),
        grid=(Rp // rb,),
        in_specs=[
            pl.BlockSpec((rb, KP), lambda i: (i, 0)),
            pl.BlockSpec((KP, G), lambda i: (0, 0)),
            pl.BlockSpec((1, G), lambda i: (0, 0)),
            pl.BlockSpec((cout, G), lambda i: (0, 0)),
        ],
        out_specs=pl.BlockSpec((rb, G), lambda i: (i, 0)),
        compiler_params=pltpu.CompilerParams(
            dimension_semantics=("parallel",)),
    )(x_p, w1.astype(jnp.bfloat16), bias.astype(jnp.float32),
      wchar.astype(jnp.float32))
    return out[:R]


def _entity_pool_kernel(ep_ref, w_ref, b_ref, mask_ref, o_ref, *, Lc, Eo):
    """Batched fused conv1d_entity (block-diag matmul) + additive mask +
    max-pool over the Lc context positions for a whole row tile."""
    ce = jnp.dot(ep_ref[...], w_ref[...],
                 preferred_element_type=jnp.float32)            # (Bt, Lc*Eo)
    ce = ce + b_ref[...] + mask_ref[...]
    pooled = ce[:, 0:Eo]
    for l in range(1, Lc):
        pooled = jnp.maximum(pooled, ce[:, l * Eo:(l + 1) * Eo])
    o_ref[...] = pooled                                          # (Bt, Eo)


def fused_entity_conv_pool(ep_flat, wce_bd, bce_bd, mask_add, *, Lc, Eo):
    """ep_flat:(B, Lc*F)  wce_bd:(Lc*F, Lc*Eo)  mask_add:(B, Lc*Eo) -> (B, Eo)."""
    B, LF = ep_flat.shape
    LE = wce_bd.shape[1]
    Bt = min(_round_up(B, 8), 512)
    Bp = _round_up(B, Bt)
    padB = Bp - B
    ep_p = jnp.pad(ep_flat, ((0, padB), (0, 0))).astype(jnp.bfloat16)
    mask_p = jnp.pad(mask_add, ((0, padB), (0, 0))).astype(jnp.float32)
    out = pl.pallas_call(
        functools.partial(_entity_pool_kernel, Lc=Lc, Eo=Eo),
        out_shape=jax.ShapeDtypeStruct((Bp, Eo), jnp.float32),
        grid=(Bp // Bt,),
        in_specs=[
            pl.BlockSpec((Bt, LF), lambda b: (b, 0)),
            pl.BlockSpec((LF, LE), lambda b: (0, 0)),
            pl.BlockSpec((1, LE), lambda b: (0, 0)),
            pl.BlockSpec((Bt, LE), lambda b: (b, 0)),
        ],
        out_specs=pl.BlockSpec((Bt, Eo), lambda b: (b, 0)),
        compiler_params=pltpu.CompilerParams(
            dimension_semantics=("parallel",)),
    )(ep_p, wce_bd.astype(jnp.bfloat16), bce_bd.astype(jnp.float32), mask_p)
    return out[:B]


# ----------------------------- JAX glue --------------------------------------
def lstm_scan(xp_dir, p, reverse=False):
    """LSTM recurrence on precomputed input projections (PyTorch gate order
    i,f,g,o).  H=8 -> too small/sequential for the MXU; stays in lax.scan."""
    # TODO(synk): recurrence kept in JAX (tiny sequential H=8 updates).
    BM, T, H4 = xp_dir.shape
    H = H4 // 4
    xs = jnp.swapaxes(xp_dir, 0, 1)                  # (T, BM, 4H)
    if reverse:
        xs = xs[::-1]
    W_hh_T = p['W_hh'].T
    b_hh = p['b_hh']

    def step(carry, xt):
        h, c = carry
        gates = xt + h @ W_hh_T + b_hh
        i, f, g, o = jnp.split(gates, 4, axis=-1)
        i = jax.nn.sigmoid(i); f = jax.nn.sigmoid(f)
        g = jnp.tanh(g); o = jax.nn.sigmoid(o)
        c = f * c + i * g
        h = o * jnp.tanh(c)
        return (h, c), None

    init = (jnp.zeros((BM, H), jnp.float32), jnp.zeros((BM, H), jnp.float32))
    (h, _), _ = jax.lax.scan(step, init, xs)
    return h                                         # final hidden (BM, H)


def entity_embedding_forward(params, words, chars, conv_mask):
    """EntityEmbedding.forward (dropouts are identity at inference)."""
    B, M, W = words.shape
    BM = B * M
    words2 = words.reshape(BM, W)
    chars2 = chars.reshape(BM, -1)
    C = chars2.shape[1]
    K = CONV_FILTER_SIZE
    Lconv = C - K + 1
    n_pool = Lconv // POOL_WIN
    assert n_pool == W, "char length must yield one pooled feature per word"

    # embedding gathers (padding_idx rows are zero in the tables)
    src_word_embeds = params['word_emb'][words2]                  # (BM, W, 16)
    char_embeds = params['char_emb'][chars2]                      # (BM, C, 4)

    # im2col for the char conv, grouped by pool window -> (BM*W, POOL_WIN*Cin*K)
    idx = jnp.arange(Lconv)[:, None] + jnp.arange(K)[None, :]
    patches = char_embeds[:, idx, :]                              # (BM, Lconv, K, Cin)
    patches = patches.transpose(0, 1, 3, 2).reshape(BM, Lconv, CHAR_EMBED_DIM * K)
    patches = patches[:, :n_pool * POOL_WIN, :]
    patches = patches.reshape(BM * n_pool, POOL_WIN * CHAR_EMBED_DIM * K)
    wemb2d = src_word_embeds.reshape(BM * W, WORD_DIM)

    # lane-dense combined input: [char im2col (84) | word emb (16) | zeros] -> 128
    x_comb = jnp.concatenate([patches, wemb2d], axis=1)
    x_comb = jnp.pad(x_comb, ((0, 0), (0, KPAD - x_comb.shape[1])))

    # one block-diagonal weight: char conv (84->28) and word part of W_ih (16->64)
    wconv_mat = params['conv1d_w'].reshape(
        CHAR_FEATURE_SIZE, CHAR_EMBED_DIM * K).T                  # (Cin*K, Cout)
    wconv_bd = jnp.kron(jnp.eye(POOL_WIN, dtype=jnp.float32), wconv_mat)
    W_ih_cat = jnp.concatenate(
        [params['lstm_fwd']['W_ih'], params['lstm_bwd']['W_ih']], axis=0).T  # (20, 64)
    wih_word = W_ih_cat[:WORD_DIM]                                # (16, 64)
    wih_char = W_ih_cat[WORD_DIM:]                                # (4, 64)
    b_ih_cat = jnp.concatenate(
        [params['lstm_fwd']['b_ih'], params['lstm_bwd']['b_ih']])  # (64,)

    CONV_IN = POOL_WIN * CHAR_EMBED_DIM * K                       # 84
    CONV_OUT = POOL_WIN * CHAR_FEATURE_SIZE                       # 28
    G8 = 8 * HIDDEN_DIM                                           # 64
    w1 = jnp.zeros((KPAD, GPAD), jnp.float32)
    w1 = w1.at[:CONV_IN, :CONV_OUT].set(wconv_bd)
    w1 = w1.at[CONV_IN:CONV_IN + WORD_DIM, GATE_OFF:GATE_OFF + G8].set(wih_word)
    bias = jnp.zeros((1, GPAD), jnp.float32)
    bias = bias.at[0, :CONV_OUT].set(jnp.tile(params['conv1d_b'], POOL_WIN))
    bias = bias.at[0, GATE_OFF:GATE_OFF + G8].set(b_ih_cat)
    wchar = jnp.zeros((CHAR_FEATURE_SIZE, GPAD), jnp.float32)
    wchar = wchar.at[:, GATE_OFF:GATE_OFF + G8].set(wih_char)

    # fused char-conv/pool/tanh + bidirectional LSTM input projection (Pallas)
    out128 = fused_char_word_inproj(x_comb, w1, bias, wchar,
                                    pool_win=POOL_WIN, cout=CHAR_FEATURE_SIZE)
    xp = out128[:, GATE_OFF:GATE_OFF + G8].reshape(BM, W, G8)     # (BM, W, 8H)
    h_fwd = lstm_scan(xp[..., :4 * HIDDEN_DIM], params['lstm_fwd'], reverse=False)
    h_bwd = lstm_scan(xp[..., 4 * HIDDEN_DIM:], params['lstm_bwd'], reverse=True)
    h_n = jnp.concatenate([h_fwd, h_bwd], axis=-1)                # (BM, 2H)
    h_n_batch = h_n.reshape(B, M, 2 * HIDDEN_DIM)

    # conv1d_entity as a block-diagonal matmul over all Lc positions + masked max
    ke = ENTITY_CONV_FILTER_SIZE
    Lc = M - ke + 1
    F = ke * 2 * HIDDEN_DIM
    eidx = jnp.arange(Lc)[:, None] + jnp.arange(ke)[None, :]
    ep = h_n_batch[:, eidx, :].reshape(B, Lc, F)
    ep_flat = ep.reshape(B, Lc * F)
    wce = params['conv1d_entity_w'].transpose(2, 1, 0).reshape(F, ENTITY_EMBED_DIM)
    wce_bd = jnp.kron(jnp.eye(Lc, dtype=jnp.float32), wce)        # (Lc*F, Lc*Eo)
    bce_bd = jnp.tile(params['conv1d_entity_b'], Lc).reshape(1, Lc * ENTITY_EMBED_DIM)
    # additive mask: conv_mask==True means "mask out" (masked_fill semantics)
    mask_add = jnp.repeat(conv_mask[:, :Lc].astype(jnp.float32) * NEG_FILL,
                          ENTITY_EMBED_DIM, axis=1)               # (B, Lc*Eo)
    entity_embed = fused_entity_conv_pool(ep_flat, wce_bd, bce_bd, mask_add,
                                          Lc=Lc, Eo=ENTITY_EMBED_DIM)
    return entity_embed                                           # (B, entity_embed_dim)


# ----------------------------- parameter init ---------------------------------
def init_params(key):
    ks = iter(jax.random.split(key, 16))

    def nrm(shape, scale=0.1):
        return scale * jax.random.normal(next(ks), shape, jnp.float32)

    def lstm_dir(din, h):
        return dict(W_ih=nrm((4 * h, din)), W_hh=nrm((4 * h, h)),
                    b_ih=nrm((4 * h,)), b_hh=nrm((4 * h,)))

    word_emb = nrm((WORD_VOCAB, WORD_DIM)).at[0].set(0.0)    # padding_idx=0
    char_emb = nrm((CHAR_VOCAB, CHAR_EMBED_DIM)).at[0].set(0.0)
    return dict(
        word_emb=word_emb, char_emb=char_emb,
        conv1d_w=nrm((CHAR_FEATURE_SIZE, CHAR_EMBED_DIM, CONV_FILTER_SIZE)),
        conv1d_b=nrm((CHAR_FEATURE_SIZE,)),
        lstm_fwd=lstm_dir(INPUT_DIM, HIDDEN_DIM),
        lstm_bwd=lstm_dir(INPUT_DIM, HIDDEN_DIM),
        conv1d_entity_w=nrm((ENTITY_EMBED_DIM, 2 * HIDDEN_DIM,
                             ENTITY_CONV_FILTER_SIZE)),
        conv1d_entity_b=nrm((ENTITY_EMBED_DIM,)),
    )


# ----------------------------- main -------------------------------------------
if __name__ == "__main__":
    key = jax.random.PRNGKey(0)
    kp, kw, kc = jax.random.split(key, 3)
    params = init_params(kp)

    B, M, W = 2, 3, 6
    C = W * POOL_WIN + CONV_FILTER_SIZE - 1          # 44 chars per context row
    Lc = M - ENTITY_CONV_FILTER_SIZE + 1

    words = jax.random.randint(kw, (B, M, W), 1, WORD_VOCAB)
    chars = jax.random.randint(kc, (B, M, C), 1, CHAR_VOCAB)
    conv_mask = jnp.tile(jnp.array([[False, False, True]]), (B, 1))[:, :Lc]

    fwd = jax.jit(entity_embedding_forward)
    out = fwd(params, words, chars, conv_mask)
    out = jax.block_until_ready(out)
    assert out.shape == (B, ENTITY_EMBED_DIM), out.shape
    assert bool(jnp.all(jnp.isfinite(out)))
    print("KERNEL_OK")
</pallas_src>

<mosaic_0001>
module attributes {stable_mosaic.version = 11 : i64} {
  func.func @_char_word_inproj_kernel(%arg0: i32, %arg1: memref<24x128xbf16, #tpu.memory_space<vmem>>, %arg2: memref<128x128xbf16, #tpu.memory_space<vmem>>, %arg3: memref<1x128xf32, #tpu.memory_space<vmem>>, %arg4: memref<4x128xf32, #tpu.memory_space<vmem>>, %arg5: memref<24x128xf32, #tpu.memory_space<vmem>>) attributes {dimension_semantics = [#tpu.dimension_semantics<parallel>], iteration_bounds = array<i64: 2>, scalar_prefetch = 0 : i64, scratch_operands = 0 : i64, tpu.core_type = #tpu.core_type<tc>, window_params = [{transform_indices = @transform_0, window_bounds = array<i64: 24, 128>}, {pipeline_mode = #tpu.pipeline_mode<synchronous>, transform_indices = @transform_1, window_bounds = array<i64: 128, 128>}, {pipeline_mode = #tpu.pipeline_mode<synchronous>, transform_indices = @transform_2, window_bounds = array<i64: 1, 128>}, {pipeline_mode = #tpu.pipeline_mode<synchronous>, transform_indices = @transform_3, window_bounds = array<i64: 4, 128>}, {transform_indices = @transform_4, window_bounds = array<i64: 24, 128>}]} {
    %c0 = arith.constant 0 : index
    %c0_0 = arith.constant 0 : index
    %0 = vector.load %arg1[%c0, %c0_0] : memref<24x128xbf16, #tpu.memory_space<vmem>>, vector<24x128xbf16>
    %c0_1 = arith.constant 0 : index
    %c0_2 = arith.constant 0 : index
    %1 = vector.load %arg2[%c0_1, %c0_2] : memref<128x128xbf16, #tpu.memory_space<vmem>>, vector<128x128xbf16>
    %cst = arith.constant dense<0.000000e+00> : vector<24x128xf32>
    %2 = tpu.matmul %0, %1, %cst {dimension_numbers = #tpu.dot_dimension_numbers<[1], [0], [0], [1], [0, 0, 1, 1], [], []>} : vector<24x128xbf16>, vector<128x128xbf16>, vector<24x128xf32> -> vector<24x128xf32>
    %c0_3 = arith.constant 0 : index
    %c0_4 = arith.constant 0 : index
    %3 = vector.load %arg3[%c0_3, %c0_4] : memref<1x128xf32, #tpu.memory_space<vmem>>, vector<1x128xf32>
    %4 = vector.broadcast %3 : vector<1x128xf32> to vector<24x128xf32>
    %5 = arith.addf %2, %4 : vector<24x128xf32>
    %6 = vector.extract_strided_slice %5 {offsets = [0, 0], sizes = [24, 4], strides = [1, 1]} : vector<24x128xf32> to vector<24x4xf32>
    %7 = vector.extract_strided_slice %5 {offsets = [0, 4], sizes = [24, 4], strides = [1, 1]} : vector<24x128xf32> to vector<24x4xf32>
    %8 = arith.maximumf %6, %7 : vector<24x4xf32>
    %9 = vector.extract_strided_slice %5 {offsets = [0, 8], sizes = [24, 4], strides = [1, 1]} : vector<24x128xf32> to vector<24x4xf32>
    %10 = arith.maximumf %8, %9 : vector<24x4xf32>
    %11 = vector.extract_strided_slice %5 {offsets = [0, 12], sizes = [24, 4], strides = [1, 1]} : vector<24x128xf32> to vector<24x4xf32>
    %12 = arith.maximumf %10, %11 : vector<24x4xf32>
    %13 = vector.extract_strided_slice %5 {offsets = [0, 16], sizes = [24, 4], strides = [1, 1]} : vector<24x128xf32> to vector<24x4xf32>
    %14 = arith.maximumf %12, %13 : vector<24x4xf32>
    %15 = vector.extract_strided_slice %5 {offsets = [0, 20], sizes = [24, 4], strides = [1, 1]} : vector<24x128xf32> to vector<24x4xf32>
    %16 = arith.maximumf %14, %15 : vector<24x4xf32>
    %17 = vector.extract_strided_slice %5 {offsets = [0, 24], sizes = [24, 4], strides = [1, 1]} : vector<24x128xf32> to vector<24x4xf32>
    %18 = arith.maximumf %16, %17 : vector<24x4xf32>
    %19 = math.tanh %18 : vector<24x4xf32>
    %20 = vector.extract_strided_slice %19 {offsets = [0, 0], sizes = [24, 1], strides = [1, 1]} : vector<24x4xf32> to vector<24x1xf32>
    %c0_5 = arith.constant 0 : index
    %c0_6 = arith.constant 0 : index
    %21 = vector.load %arg4[%c0_5, %c0_6] : memref<4x128xf32, #tpu.memory_space<vmem>>, vector<1x128xf32>
    %22 = vector.broadcast %20 : vector<24x1xf32> to vector<24x128xf32>
    %23 = vector.broadcast %21 : vector<1x128xf32> to vector<24x128xf32>
    %24 = arith.mulf %22, %23 : vector<24x128xf32>
    %25 = vector.extract_strided_slice %19 {offsets = [0, 1], sizes = [24, 1], strides = [1, 1]} : vector<24x4xf32> to vector<24x1xf32>
    %c1 = arith.constant 1 : index
    %c0_7 = arith.constant 0 : index
    %26 = vector.load %arg4[%c1, %c0_7] : memref<4x128xf32, #tpu.memory_space<vmem>>, vector<1x128xf32>
    %27 = vector.broadcast %25 : vector<24x1xf32> to vector<24x128xf32>
    %28 = vector.broadcast %26 : vector<1x128xf32> to vector<24x128xf32>
    %29 = arith.mulf %27, %28 : vector<24x128xf32>
    %30 = arith.addf %24, %29 : vector<24x128xf32>
    %31 = vector.extract_strided_slice %19 {offsets = [0, 2], sizes = [24, 1], strides = [1, 1]} : vector<24x4xf32> to vector<24x1xf32>
    %c2 = arith.constant 2 : index
    %c0_8 = arith.constant 0 : index
    %32 = vector.load %arg4[%c2, %c0_8] : memref<4x128xf32, #tpu.memory_space<vmem>>, vector<1x128xf32>
    %33 = vector.broadcast %31 : vector<24x1xf32> to vector<24x128xf32>
    %34 = vector.broadcast %32 : vector<1x128xf32> to vector<24x128xf32>
    %35 = arith.mulf %33, %34 : vector<24x128xf32>
    %36 = arith.addf %30, %35 : vector<24x128xf32>
    %37 = vector.extract_strided_slice %19 {offsets = [0, 3], sizes = [24, 1], strides = [1, 1]} : vector<24x4xf32> to vector<24x1xf32>
    %c3 = arith.constant 3 : index
    %c0_9 = arith.constant 0 : index
    %38 = vector.load %arg4[%c3, %c0_9] : memref<4x128xf32, #tpu.memory_space<vmem>>, vector<1x128xf32>
    %39 = vector.broadcast %37 : vector<24x1xf32> to vector<24x128xf32>
    %40 = vector.broadcast %38 : vector<1x128xf32> to vector<24x128xf32>
    %41 = arith.mulf %39, %40 : vector<24x128xf32>
    %42 = arith.addf %36, %41 : vector<24x128xf32>
    %43 = arith.addf %5, %42 : vector<24x128xf32>
    %c0_10 = arith.constant 0 : index
    %c0_11 = arith.constant 0 : index
    %44 = vector.load %arg5[%c0_10, %c0_11] : memref<24x128xf32, #tpu.memory_space<vmem>>, vector<24x128xf32>
    tpu.vector_store %arg5[%c0_10, %c0_11], %43 {strides = array<i32>} : memref<24x128xf32, #tpu.memory_space<vmem>>, vector<24x128xf32>,
    return
  }
  func.func @transform_0(%arg0: i32) -> (i32, i32) {
    %c0_i32 = arith.constant 0 : i32
    %c0_i32_0 = arith.constant 0 : i32
    return %arg0, %c0_i32 : i32, i32
  }
  func.func @transform_1(%arg0: i32) -> (i32, i32) {
    %c0_i32 = arith.constant 0 : i32
    %c0_i32_0 = arith.constant 0 : i32
    %c0_i32_1 = arith.constant 0 : i32
    return %c0_i32, %c0_i32_0 : i32, i32
  }
  func.func @transform_2(%arg0: i32) -> (i32, i32) {
    %c0_i32 = arith.constant 0 : i32
    %c0_i32_0 = arith.constant 0 : i32
    %c0_i32_1 = arith.constant 0 : i32
    return %c0_i32, %c0_i32_0 : i32, i32
  }
  func.func @transform_3(%arg0: i32) -> (i32, i32) {
    %c0_i32 = arith.constant 0 : i32
    %c0_i32_0 = arith.constant 0 : i32
    %c0_i32_1 = arith.constant 0 : i32
    return %c0_i32, %c0_i32_0 : i32, i32
  }
  func.func @transform_4(%arg0: i32) -> (i32, i32) {
    %c0_i32 = arith.constant 0 : i32
    %c0_i32_0 = arith.constant 0 : i32
    return %arg0, %c0_i32 : i32, i32
  }
}

module attributes {stable_mosaic.version = 11 : i64} {
  func.func @_entity_pool_kernel(%arg0: i32, %arg1: memref<8x48xbf16, #tpu.memory_space<vmem>>, %arg2: memref<48x12xbf16, #tpu.memory_space<vmem>>, %arg3: memref<1x12xf32, #tpu.memory_space<vmem>>, %arg4: memref<8x12xf32, #tpu.memory_space<vmem>>, %arg5: memref<8x4xf32, #tpu.memory_space<vmem>>) attributes {dimension_semantics = [#tpu.dimension_semantics<parallel>], iteration_bounds = array<i64: 1>, scalar_prefetch = 0 : i64, scratch_operands = 0 : i64, tpu.core_type = #tpu.core_type<tc>, window_params = [{transform_indices = @transform_0, window_bounds = array<i64: 8, 48>}, {pipeline_mode = #tpu.pipeline_mode<synchronous>, transform_indices = @transform_1, window_bounds = array<i64: 48, 12>}, {pipeline_mode = #tpu.pipeline_mode<synchronous>, transform_indices = @transform_2, window_bounds = array<i64: 1, 12>}, {transform_indices = @transform_3, window_bounds = array<i64: 8, 12>}, {transform_indices = @transform_4, window_bounds = array<i64: 8, 4>}]} {
    %c0 = arith.constant 0 : index
    %c0_0 = arith.constant 0 : index
    %0 = vector.load %arg1[%c0, %c0_0] : memref<8x48xbf16, #tpu.memory_space<vmem>>, vector<8x48xbf16>
    %c0_1 = arith.constant 0 : index
    %c0_2 = arith.constant 0 : index
    %1 = vector.load %arg2[%c0_1, %c0_2] : memref<48x12xbf16, #tpu.memory_space<vmem>>, vector<48x12xbf16>
    %cst = arith.constant dense<0.000000e+00> : vector<8x12xf32>
    %2 = tpu.matmul %0, %1, %cst {dimension_numbers = #tpu.dot_dimension_numbers<[1], [0], [0], [1], [0, 0, 1, 1], [], []>} : vector<8x48xbf16>, vector<48x12xbf16>, vector<8x12xf32> -> vector<8x12xf32>
    %c0_3 = arith.constant 0 : index
    %c0_4 = arith.constant 0 : index
    %3 = vector.load %arg3[%c0_3, %c0_4] : memref<1x12xf32, #tpu.memory_space<vmem>>, vector<1x12xf32>
    %4 = vector.broadcast %3 : vector<1x12xf32> to vector<8x12xf32>
    %5 = arith.addf %2, %4 : vector<8x12xf32>
    %c0_5 = arith.constant 0 : index
    %c0_6 = arith.constant 0 : index
    %6 = vector.load %arg4[%c0_5, %c0_6] : memref<8x12xf32, #tpu.memory_space<vmem>>, vector<8x12xf32>
    %7 = arith.addf %5, %6 : vector<8x12xf32>
    %8 = vector.extract_strided_slice %7 {offsets = [0, 0], sizes = [8, 4], strides = [1, 1]} : vector<8x12xf32> to vector<8x4xf32>
    %9 = vector.extract_strided_slice %7 {offsets = [0, 4], sizes = [8, 4], strides = [1, 1]} : vector<8x12xf32> to vector<8x4xf32>
    %10 = arith.maximumf %8, %9 : vector<8x4xf32>
    %11 = vector.extract_strided_slice %7 {offsets = [0, 8], sizes = [8, 4], strides = [1, 1]} : vector<8x12xf32> to vector<8x4xf32>
    %12 = arith.maximumf %10, %11 : vector<8x4xf32>
    %c0_7 = arith.constant 0 : index
    %c0_8 = arith.constant 0 : index
    %13 = vector.load %arg5[%c0_7, %c0_8] : memref<8x4xf32, #tpu.memory_space<vmem>>, vector<8x4xf32>
    tpu.vector_store %arg5[%c0_7, %c0_8], %12 {strides = array<i32>} : memref<8x4xf32, #tpu.memory_space<vmem>>, vector<8x4xf32>,
    return
  }
  func.func @transform_0(%arg0: i32) -> (i32, i32) {
    %c0_i32 = arith.constant 0 : i32
    %c0_i32_0 = arith.constant 0 : i32
    return %arg0, %c0_i32 : i32, i32
  }
  func.func @transform_1(%arg0: i32) -> (i32, i32) {
    %c0_i32 = arith.constant 0 : i32
    %c0_i32_0 = arith.constant 0 : i32
    %c0_i32_1 = arith.constant 0 : i32
    return %c0_i32, %c0_i32_0 : i32, i32
  }
  func.func @transform_2(%arg0: i32) -> (i32, i32) {
    %c0_i32 = arith.constant 0 : i32
    %c0_i32_0 = arith.constant 0 : i32
    %c0_i32_1 = arith.constant 0 : i32
    return %c0_i32, %c0_i32_0 : i32, i32
  }
  func.func @transform_3(%arg0: i32) -> (i32, i32) {
    %c0_i32 = arith.constant 0 : i32
    %c0_i32_0 = arith.constant 0 : i32
    return %arg0, %c0_i32 : i32, i32
  }
  func.func @transform_4(%arg0: i32) -> (i32, i32) {
    %c0_i32 = arith.constant 0 : i32
    %c0_i32_0 = arith.constant 0 : i32
    return %arg0, %c0_i32 : i32, i32
  }
}

</mosaic_0001>

<bundles_post_ra>
// kernel: custom-call.3
= control target key start
LH: loop header
LB: loop body
LE: loop exit
PB: predicated region body
PF: predicated region fallthrough
CT: control target
= control target key end

     0   :  { %s6_s0 = inlined_call_operand.vmem [shape: f32[6,8], index: 0, kind: output, shape index: {}]  }

// kernel: custom-call.2
= control target key start
LH: loop header
LB: loop body
LE: loop exit
PB: predicated region body
PF: predicated region fallthrough
CT: control target
= control target key end

     0   :  { %s6_s0 = inlined_call_operand.vmem [shape: bf16[6,8], index: 0, kind: output, shape index: {}]  }

// kernel: tile.18
= control target key start
LH: loop header
LB: loop body
LE: loop exit
PB: predicated region body
PF: predicated region fallthrough
CT: control target
= control target key end

     0   :  { %s22_s0 = inlined_call_operand.vmem [shape: f32[4], index: 0, kind: input, shape index: {}]   ;;  %s23_s1 = inlined_call_operand.vmem [shape: f32[3,4], index: 1, kind: output, shape index: {}]  }
   0x1   :  { %v4_v0 = vld [vmem:[%s22_s0] ss:$0 sm:$0xff] }
   0x2   :  { %5 = vst [vmem:[%s23_s1] sm:$0xf] %v4_v0 }

// kernel: tile.19
= control target key start
LH: loop header
LB: loop body
LE: loop exit
PB: predicated region body
PF: predicated region fallthrough
CT: control target
= control target key end

     0   :  { %s30_s8 = smov 4   ;;  %vm7_vm0 = vcmask 31744   ;;  %vm13_vm1 = vcmask 97344   ;;  %vm19_vm2 = vcmask 64544   ;;  %s47_s0 = inlined_call_operand.vmem [shape: f32[3,4], index: 0, kind: input, shape index: {}]   ;;  %s48_s1 = inlined_call_operand.vmem [shape: f32[1,12], index: 1, kind: output, shape index: {}]  }
   0x1   :  { %v4_v0 = vld [vmem:[%s47_s0] sm:$0xf]  ;;  %s29_s0 = smov 8  }
   0x2   :  { %5 = vst [vmem:[#allocation1] sm:$0xf] %v4_v0 }
   0x9   :  { %v10_v1 = vld [vmem:[#allocation1 + $0x2] sm:$0x1]   ;;  %v16_v2 = vld [vmem:[#allocation1 + $0x1] sm:$0x1]   ;;  %v6_v3 = vld [vmem:[#allocation1] sm:$0x1]  }
   0xa   :  { %11 = vrot.lane.b32.xlu0 %v10_v1, %s29_s0  ;;  %8 = vst.msk [vmem:[#allocation0] sm:$0x1] %vm7_vm0, %v6_v3  }
  0x12   :  { %17 = vrot.lane.b32.xlu0 %v16_v2, %s30_s8 }
  0x7c   :  { %v12_v4 = vpop.permute.xlu0 %11  }
  0x7d   :  { %14 = vst.msk [vmem:[#allocation0] sm:$0x1] %vm13_vm1, %v12_v4  }
  0x84   :  { %v18_v5 = vpop.permute.xlu0 %17  }
  0x85   :  { %20 = vst.msk [vmem:[#allocation0] sm:$0x1] %vm19_vm2, %v18_v5  }
  0x8c   :  { %v23_v6 = vld [vmem:[#allocation0] sm:$0x1] }
  0x8d   :  { %26 = vst [vmem:[%s48_s1] sm:$0x1] %v23_v6 }

// kernel: entity_embedding_forward.3
= control target key start
LH: loop header
LB: loop body
LE: loop exit
PB: predicated region body
PF: predicated region fallthrough
CT: control target
= control target key end

     0   :  { %vm47_vm0 = vcmask 392192   ;;  %s100_s27 = smov 124   ;;  %vm75_vm1 = vcmask 31744   ;;  %s148_s1 = inlined_call_operand.vmem [shape: bf16[48,12], index: 1, kind: input, shape index: {}]   ;;  %s149_s2 = inlined_call_operand.vmem [shape: f32[1,12], index: 2, kind: input, shape index: {}]   ;;  %s150_s0 = inlined_call_operand.vmem [shape: bf16[8,48], index: 0, kind: input, shape index: {}]   ;;  %s151_s3 = inlined_call_operand.vmem [shape: f32[8,12], index: 3, kind: input, shape index: {}]   ;;  %s152_s4 = inlined_call_operand.vmem [shape: f32[8,4], index: 4, kind: output, shape index: {}]  }
   0x1   :  { %v96_v0 = vld [vmem:[%s148_s1 + $0x10] sm:$0xff]  ;;  %v95_v1 = vld [vmem:[%s148_s1 + $0x8] sm:$0xff]  ;;  %v94_v2 = vld [vmem:[%s148_s1] sm:$0xff]  ;;  %s101_s1 = smov 120  }
   0x2   :  { %56 = vmatpush.bf16.msra.mxu0 %v96_v0  ;;  %v18_v3 = vld [vmem:[%s150_s0] sm:$0xf] }
   0x3   :  { %v99_v4 = vld [vmem:[%s149_s2] ss:$0 sm:$0xff] }
   0x4   :  { %v64_v6 = vld [vmem:[%s151_s3] sm:$0xff] }
   0x6   :  { %57 = vmatpush.bf16.msra.mxu0 %v95_v1 }
   0xa   :  { %58 = vmatpush.bf16.msra.mxu0 %v94_v2 }
   0xd   :  { %93 = vmatmul.msk.bf16.vlgmr.msra.gmra.mxu0 %vm47_vm0, %v18_v3 }
  0x8a   :  { %v60_v5 = vpop.f32.mrf.mxu0 }
  0x8b   :  { %v61_v7 = vadd.f32 %v99_v4, %v60_v5 }
  0x8d   :  { %v65_v8 = vadd.f32 %v64_v6, %v61_v7 }
  0x8f   :  { %67 = vrot.lane.b32.xlu0 %v65_v8, %s100_s27 }
  0x92   :  { %v62_v9 = vpop.f32.mrf.mxu0 }
  0x97   :  { %71 = vrot.lane.b32.xlu0 %v65_v8, %s101_s1 }
 0x101   :  { %v68_v10 = vpop.permute.xlu0 %67 }
 0x102   :  { %v70_v11 = vmax.f32 %v65_v8, %v68_v10 }
 0x109   :  { %v72_v12 = vpop.permute.xlu0 %71 }
 0x10a   :  { %v74_v13 = vmax.f32 %v70_v11, %v72_v12 }
 0x10c   :  { %76 = vst.msk [vmem:[%s152_s4] sm:$0xff] %vm75_vm1, %v74_v13 }

// kernel: entity_embedding_forward.2
= control target key start
LH: loop header
LB: loop body
LE: loop exit
PB: predicated region body
PF: predicated region fallthrough
CT: control target
= control target key end

     0   :  { %s665_s15 = smov 0   ;;  %s755_s0 = inlined_call_operand.vmem [shape: bf16[48,128], index: 0, kind: input, shape index: {}]   ;;  %s756_s1 = inlined_call_operand.vmem [shape: bf16[128,128], index: 1, kind: input, shape index: {}]   ;;  %s757_s2 = inlined_call_operand.vmem [shape: f32[1,128], index: 2, kind: input, shape index: {}]   ;;  %s758_s3 = inlined_call_operand.vmem [shape: f32[4,128], index: 3, kind: input, shape index: {}]   ;;  %s759_s4 = inlined_call_operand.vmem [shape: f32[48,128], index: 4, kind: output, shape index: {}]  }
   0x1 LB: > { %s520_s16 = sadd.s32 4294967295, %s628_s15   ;;  %p524_p0 = scmp.ge.s32.totalorder %s628_s15, 1  ;;  %s628_s15 = sphi %s665_s15, %s14_s15  }
   0x2   : > { %p163_p1 = scmp.lt.s32.totalorder %s628_s15, 3 }
   0x4   : > { %p164_p2 = pnand %p524_p0, %p163_p1 }
   0x5   : > { %s189_s21 = smul.u32 (!%p164_p2), 3, %s520_s16  ;;  %s630_s14 = smov (!%p164_p2), 120  }
   0x6   : > { %167 = sbr.rel (%p164_p2) target bundleno = 493 (0x1ed), region = 36  ;;  %s631_s16 = smov (!%p164_p2), 124  }
   0x7   : > { %p190_p3 = scmp.lt.s32.totalorder (!%p164_p2), %s189_s21, 5  ;;  %s632_s17 = smov (!%p164_p2), 116  }
   0x8   : > { %s633_s18 = smov (!%p164_p2), 112   ;;  %s634_s19 = smov (!%p164_p2), 108  }
   0x9   : > { %s635_s20 = smov (!%p164_p2), 104  }
   0xb   : > { %v573_v0 = vld [vmem:[%s756_s1 + $0x38] sm:$0xff]  ;;  %v572_v1 = vld [vmem:[%s756_s1 + $0x30] sm:$0xff]  ;;  %v571_v2 = vld [vmem:[%s756_s1 + $0x28] sm:$0xff]  ;;  %s761_s21 = smov (!%p190_p3, %s189_s21), 5  ;;  %v636_v23 = vmov 0   ;;  %v637_v34 = vmov 1  }
   0xc   : > { %282 = vmatpush.bf16.msra.mxu0 %v573_v0  ;;  %574 = vmatpush.bf16.msra.mxu1 %v573_v0  ;;  %v570_v3 = vld [vmem:[%s756_s1 + $0x20] sm:$0xff]  ;;  %v569_v4 = vld [vmem:[%s756_s1 + $0x18] sm:$0xff]  ;;  %s525_s28 = sshll.u32 %s761_s21, 2  ;;  %v568_v5 = vld [vmem:[%s756_s1 + $0x10] sm:$0xff]  ;;  %v638_v61 = vmov 2   ;;  %v639_v62 = vmov 3  }
   0xd   : > { %s193_s7 = scalar_lea.vmem %s755_s0, %s525_s28  ;;  %v567_v6 = vld [vmem:[%s756_s1 + $0x8] sm:$0xff]  ;;  %v566_v9 = vld [vmem:[%s756_s1] sm:$0xff]  ;;  %601 = vset.pattern.permute.xlu2 %v636_v23  ;;  %600 = vset.pattern.permute.xlu0 %v636_v23  ;;  %s526_s30 = sshll.u32 %s761_s21, 3 }
   0xe   : > { %v203_v7 = vld [vmem:[%s193_s7 + $0x8] sm:$0xf]  ;;  %v565_v10 = vld [vmem:[%s193_s7] sm:$0xff]  ;;  %602 = vset.pattern.permute.xlu1 %v637_v34  ;;  %s199_s7 = scalar_lea.vmem %s759_s4, %s526_s30 }
   0xf   : > { %v229_v8 = vunpack.c.l.b16 %v203_v7  ;;  %v611_v12 = vld [vmem:[%s757_s2] ss:$0 sm:$0xff] }
  0x10   : > { %283 = vmatpush.bf16.msra.mxu0 %v572_v1  ;;  %575 = vmatpush.bf16.msra.mxu1 %v572_v1 }
  0x11   : > { %v231_v11 = vpack.c.b16 %v229_v8, %v229_v8  ;;  %v614_v8 = vld [vmem:[%s758_s3 + $0x2] ss:$0 sm:$0xff] }
  0x14   : > { %284 = vmatpush.bf16.msra.mxu0 %v571_v2  ;;  %576 = vmatpush.bf16.msra.mxu1 %v571_v2 }
  0x18   : > { %285 = vmatpush.bf16.msra.mxu0 %v570_v3  ;;  %577 = vmatpush.bf16.msra.mxu1 %v570_v3 }
  0x1c   : > { %286 = vmatpush.bf16.msra.mxu0 %v569_v4  ;;  %578 = vmatpush.bf16.msra.mxu1 %v569_v4  ;;  %v612_v4 = vld [vmem:[%s758_s3] ss:$0 sm:$0xff] }
  0x20   : > { %287 = vmatpush.bf16.msra.mxu0 %v568_v5  ;;  %579 = vmatpush.bf16.msra.mxu1 %v568_v5  ;;  %v613_v5 = vld [vmem:[%s758_s3 + $0x1] ss:$0 sm:$0xff] }
  0x24   : > { %288 = vmatpush.bf16.msra.mxu0 %v567_v6  ;;  %580 = vmatpush.bf16.msra.mxu1 %v567_v6 }
  0x28   : > { %289 = vmatpush.bf16.msra.mxu0 %v566_v9  ;;  %581 = vmatpush.bf16.msra.mxu1 %v566_v9  ;;  %v615_v9 = vld [vmem:[%s758_s3 + $0x3] ss:$0 sm:$0xff] }
  0x2b   : > { %290 = vmatmul.bf16.vlgmr.msra.gmra.mxu0 %v565_v10  ;;  %295 = vmatmul.bf16.vlgmr.msra.gmra.mxu1 %v231_v11 }
  0xa8   : > { %v291_v13 = vpop.f32.mrf.mxu0  ;;  %v296_v14 = vpop.f32.mrf.mxu1 }
  0xa9   : > { %v706_v15 = vadd.f32 %v611_v12, %v291_v13  ;;  %v708_v16 = vadd.f32 %v611_v12, %v296_v14 }
  0xab   : > { %319 = vrot.lane.b32.xlu2 %v708_v16, %s630_s14  ;;  %307 = vrot.lane.b32.xlu1 %v708_v16, %s631_s16 }
  0xac   : > { %303 = vrot.lane.b32.xlu0 %v706_v15, %s631_s16 }
  0xb0   : > { %v298_v17 = vpop.f32.mrf.mxu1  ;;  %v293_v18 = vpop.f32.mrf.mxu0 }
  0xb1   : > { %v716_v19 = vadd.f32 %v611_v12, %v293_v18 }
  0xb3   : > { %331 = vrot.lane.b32.xlu2 %v708_v16, %s632_s17  ;;  %315 = vrot.lane.b32.xlu1 %v706_v15, %s630_s14 }
  0xb4   : > { %327 = vrot.lane.b32.xlu0 %v706_v15, %s632_s17 }
  0xbb   : > { %343 = vrot.lane.b32.xlu2 %v708_v16, %s633_s18  ;;  %329 = vrot.lane.b32.xlu1 %v716_v19, %s632_s17 }
  0xbc   : > { %339 = vrot.lane.b32.xlu0 %v706_v15, %s633_s18 }
  0xc3   : > { %355 = vrot.lane.b32.xlu2 %v708_v16, %s634_s19  ;;  %341 = vrot.lane.b32.xlu1 %v716_v19, %s633_s18 }
  0xc4   : > { %305 = vrot.lane.b32.xlu0 %v716_v19, %s631_s16 }
  0xcb   : > { %317 = vrot.lane.b32.xlu2 %v716_v19, %s630_s14  ;;  %353 = vrot.lane.b32.xlu1 %v716_v19, %s634_s19 }
  0xcc   : > { %351 = vrot.lane.b32.xlu0 %v706_v15, %s634_s19 }
  0xd3   : > { %367 = vrot.lane.b32.xlu2 %v708_v16, %s635_s20  ;;  %365 = vrot.lane.b32.xlu1 %v716_v19, %s635_s20 }
  0xd4   : > { %363 = vrot.lane.b32.xlu0 %v706_v15, %s635_s20 }
 0x105   : > { %v320_v20 = vpop.permute.xlu2 %319 }
 0x10d   : > { %v332_v21 = vpop.permute.xlu2 %331 }
 0x115   : > { %v344_v22 = vpop.permute.xlu2 %343 }
 0x11d   : > { %v356_v24 = vpop.permute.xlu2 %355  ;;  %v308_v25 = vpop.permute.xlu1 %307 }
 0x11e   : > { %v314_v26 = vmax.f32 %v708_v16, %v308_v25  ;;  %v304_v27 = vpop.permute.xlu0 %303 }
 0x11f   : > { %v312_v45 = vmax.f32 %v706_v15, %v304_v27 }
 0x120   : > { %v326_v28 = vmax.f32 %v314_v26, %v320_v20 }
 0x122   : > { %v338_v29 = vmax.f32 %v326_v28, %v332_v21 }
 0x124   : > { %v350_v33 = vmax.f32 %v338_v29, %v344_v22 }
 0x125   : > { %v318_v30 = vpop.permute.xlu2 %317  ;;  %v316_v31 = vpop.permute.xlu1 %315 }
 0x126   : > { %v328_v32 = vpop.permute.xlu0 %327  ;;  %v362_v35 = vmax.f32 %v350_v33, %v356_v24  ;;  %v324_v47 = vmax.f32 %v312_v45, %v316_v31 }
 0x128   : > { %v336_v51 = vmax.f32 %v324_v47, %v328_v32 }
 0x12d   : > { %v368_v36 = vpop.permute.xlu2 %367  ;;  %v330_v37 = vpop.permute.xlu1 %329 }
 0x12e   : > { %v374_v38 = vmax.f32 %v362_v35, %v368_v36  ;;  %v340_v39 = vpop.permute.xlu0 %339 }
 0x12f   : > { %v348_v52 = vmax.f32 %v336_v51, %v340_v39 }
 0x130   : > { %616 = vtanh.f32 %v374_v38 }
 0x135   : > { %v342_v40 = vpop.permute.xlu1 %341 }
 0x136   : > { %v617_v41 = vpop.eup %616  ;;  %v306_v42 = vpop.permute.xlu0 %305 }
 0x137   : > { %v313_v43 = vmax.f32 %v716_v19, %v306_v42  ;;  %391 = vperm.xlu2 %601, %v617_v41  }
 0x139   : > { %v325_v44 = vmax.f32 %v313_v43, %v318_v30 }
 0x13b   : > { %v337_v46 = vmax.f32 %v325_v44, %v330_v37 }
 0x13d   : > { %v354_v48 = vpop.permute.xlu1 %353  ;;  %v349_v50 = vmax.f32 %v337_v46, %v342_v40 }
 0x13e   : > { %v352_v49 = vpop.permute.xlu0 %351 }
 0x13f   : > { %606 = vset.pattern.permute.xlu2 %v637_v34  ;;  %v361_v53 = vmax.f32 %v349_v50, %v354_v48  ;;  %v360_v54 = vmax.f32 %v348_v52, %v352_v49 }
 0x145   : > { %v366_v55 = vpop.permute.xlu1 %365 }
 0x146   : > { %v373_v56 = vmax.f32 %v361_v53, %v366_v55  ;;  %v364_v57 = vpop.permute.xlu0 %363 }
 0x147   : > { %v372_v58 = vmax.f32 %v360_v54, %v364_v57 }
 0x148   : > { %618 = vtanh.f32 %v373_v56 }
 0x149   : > { %620 = vtanh.f32 %v372_v58 }
 0x14e   : > { %v619_v59 = vpop.eup %618 }
 0x14f   : > { %v621_v60 = vpop.eup %620  ;;  %404 = vperm.xlu2 %606, %v619_v59  }
 0x150   : > { %400 = vperm.xlu1 %602, %v621_v60   ;;  %381 = vperm.xlu0 %600, %v621_v60  }
 0x157   : > { %607 = vset.pattern.permute.xlu2 %v638_v61 }
 0x158   : > { %604 = vset.pattern.permute.xlu1 %v638_v61  ;;  %603 = vset.pattern.permute.xlu0 %v637_v34 }
 0x159   : > { %424 = vperm.xlu2 %607, %v619_v59   ;;  %420 = vperm.xlu1 %604, %v621_v60  }
 0x15a   : > { %408 = vperm.xlu0 %603, %v617_v41  }
 0x161   : > { %608 = vset.pattern.permute.xlu2 %v639_v62  ;;  %428 = vperm.xlu1 %604, %v617_v41  }
 0x162   : > { %609 = vset.pattern.permute.xlu0 %v639_v62  ;;  %440 = vperm.xlu2 %608, %v621_v60  }
 0x163   : > { %444 = vperm.xlu0 %609, %v619_v59  }
 0x169   : > { %605 = vset.pattern.permute.xlu1 %v636_v23 }
 0x16a   : > { %386 = vperm.xlu1 %605, %v619_v59  }
 0x172   : > { %610 = vset.pattern.permute.xlu1 %v639_v62 }
 0x173   : > { %448 = vperm.xlu1 %610, %v617_v41  }
 0x191   : > { %v392_v63 = vpop.permute.xlu2 %391 }
 0x192   : > { %v397_v32 = vmul.f32 %v612_v4, %v392_v63 }
 0x1a9   : > { %v405_v0 = vpop.permute.xlu2 %404 }
 0x1aa   : > { %v413_v24 = vmul.f32 %v613_v5, %v405_v0 }
 0x1b3   : > { %v425_v1 = vpop.permute.xlu2 %424 }
 0x1b4   : > { %v433_v27 = vmul.f32 %v614_v8, %v425_v1 }
 0x1bc   : > { %v441_v10 = vpop.permute.xlu2 %440 }
 0x1bd   : > { %v452_v14 = vmul.f32 %v615_v9, %v441_v10 }
 0x1c2   : > { %v401_v2 = vpop.permute.xlu1 %400  ;;  %v382_v3 = vpop.permute.xlu0 %381 }
 0x1c3   : > { %v412_v6 = vmul.f32 %v613_v5, %v401_v2  ;;  %v395_v7 = vmul.f32 %v612_v4, %v382_v3 }
 0x1c5   : > { %v415_v12 = vadd.f32 %v412_v6, %v395_v7 }
 0x1cb   : > { %v421_v11 = vpop.permute.xlu1 %420 }
 0x1cc   : > { %v432_v13 = vmul.f32 %v614_v8, %v421_v11  ;;  %v409_v22 = vpop.permute.xlu0 %408 }
 0x1cd   : > { %v414_v29 = vmul.f32 %v613_v5, %v409_v22 }
 0x1ce   : > { %v435_v17 = vadd.f32 %v432_v13, %v415_v12 }
 0x1cf   : > { %v417_v35 = vadd.f32 %v414_v29, %v397_v32 }
 0x1d0   : > { %v455_v18 = vadd.f32 %v452_v14, %v435_v17 }
 0x1d2   : > { %v458_v20 = vadd.f32 %v455_v18, %v706_v15 }
 0x1d3   : > { %v429_v21 = vpop.permute.xlu1 %428 }
 0x1d4   : > { %461 = vst [vmem:[%s199_s7] sm:$0xff] %v458_v20  ;;  %v434_v33 = vmul.f32 %v614_v8, %v429_v21 }
 0x1d5   : > { %v445_v26 = vpop.permute.xlu0 %444 }
 0x1d6   : > { %v453_v30 = vmul.f32 %v615_v9, %v445_v26  ;;  %v437_v15 = vadd.f32 %v434_v33, %v417_v35 }
 0x1dc   : > { %v387_v23 = vpop.permute.xlu1 %386 }
 0x1dd   : > { %v396_v25 = vmul.f32 %v612_v4, %v387_v23 }
 0x1df   : > { %v416_v28 = vadd.f32 %v413_v24, %v396_v25 }
 0x1e1   : > { %v436_v31 = vadd.f32 %v433_v27, %v416_v28 }
 0x1e3   : > { %v456_v34 = vadd.f32 %v453_v30, %v436_v31 }
 0x1e5   : > { %v459_v36 = vadd.f32 %v456_v34, %v716_v19  ;;  %v449_v37 = vpop.permute.xlu1 %448 }
 0x1e6   : > { %v454_v38 = vmul.f32 %v615_v9, %v449_v37 }
 0x1e7   : > { %462 = vst [vmem:[%s199_s7 + $0x8] sm:$0xff] %v459_v36 }
 0x1e8   : > { %v457_v39 = vadd.f32 %v454_v38, %v437_v15 }
 0x1ea   : > { %v460_v40 = vadd.f32 %v457_v39, %v708_v16 }
 0x1ec   : > { %463 = vst [vmem:[%s199_s7 + $0x10] sm:$0xff] %v460_v40 }
 0x1ed PF: > { %s14_s15 = sadd.s32 1, %s628_s15  }
 0x1ee   : > { %p11_p4 = scmp.ge.s32.totalorder %s14_s15, 4  }
 0x1f0   :  { %13 = sbr.rel (!%p11_p4) target bundleno = 1 (0x1), region = 66 }

</bundles_post_ra>
